<compile_context>
chip_gen: v6e
topology: v6e:2x2x1
jax: 0.10.0
libtpu: 0.0.40
codegen_flags: <defaults>
</compile_context>

<pallas_src>
import jax
import jax.numpy as jnp
from jax.experimental import pallas as pl
from jax.experimental.pallas import tpu as pltpu


def _pick_tile(dim, candidates):
    """Largest candidate tile that evenly divides `dim`, else the full dim."""
    for c in candidates:
        if c <= dim and dim % c == 0:
            return c
    return dim


# ----------------------------------------------------------------------------
# Kernel 1: pre-mix the selected expert weights
#   W_mix[i, j] = sum_k gates[k] * W[idx[k], i, j]
# grid = (H//tk, H//tn, K); expert (reduction) axis last; idx scalar-prefetched
# so only the K selected weights are streamed HBM -> VMEM.
# ----------------------------------------------------------------------------
def _mix_kernel(idx_ref, gates_ref, w_ref, o_ref, acc_ref):
    kk = pl.program_id(2)

    @pl.when(kk == 0)
    def _():
        acc_ref[...] = jnp.zeros_like(acc_ref)

    g = gates_ref[kk]                               # scalar f32 from SMEM
    acc_ref[...] += g * w_ref[0]                    # f32 axpy (VPU)

    @pl.when(kk == pl.num_programs(2) - 1)
    def _():
        o_ref[...] = acc_ref[...].astype(o_ref.dtype)


def mix_expert_weights(w_experts, gates, idx, *, out_dtype=jnp.bfloat16):
    """W_mix = sum_k gates[k] * w_experts[idx[k]]  -> (H, H) in out_dtype."""
    _, H, N = w_experts.shape
    K = idx.shape[0]
    tk = _pick_tile(H, (512, 256, 128))             # sublane dim of the weight tile
    tn = _pick_tile(N, (512, 256, 128))             # lane dim of the weight tile
    grid = (H // tk, N // tn, K)
    return pl.pallas_call(
        _mix_kernel,
        out_shape=jax.ShapeDtypeStruct((H, N), out_dtype),
        grid_spec=pltpu.PrefetchScalarGridSpec(
            num_scalar_prefetch=1,                  # idx -> SMEM, drives the w index_map
            grid=grid,
            in_specs=[
                pl.BlockSpec(memory_space=pltpu.MemorySpace.SMEM),            # gates (K,)
                pl.BlockSpec((1, tk, tn), lambda i, j, kk, idx: (idx[kk], i, j)),
            ],
            out_specs=pl.BlockSpec((tk, tn), lambda i, j, kk, idx: (i, j)),
            scratch_shapes=[pltpu.VMEM((tk, tn), jnp.float32)],
        ),
        compiler_params=pltpu.CompilerParams(
            dimension_semantics=("parallel", "parallel", "arbitrary")),
    )(idx, gates, w_experts)


# ----------------------------------------------------------------------------
# Kernel 2: out = 1 + X @ W_mix   over flattened rows (B*L, H)
# bf16 operands, f32 accumulation directly into the resident output block,
# '+1' folded into the block init at the first contraction step.
# ----------------------------------------------------------------------------
def _matmul_bias1_kernel(x_ref, w_ref, o_ref):
    @pl.when(pl.program_id(2) == 0)
    def _():
        o_ref[...] = jnp.full_like(o_ref, 1.0)      # fold the '+1' into the init

    o_ref[...] += jnp.dot(x_ref[...], w_ref[...],
                          preferred_element_type=jnp.float32)


def dense_matmul_bias1(x_flat, w_mix):
    M, H = x_flat.shape
    _, N = w_mix.shape
    tm = _pick_tile(M, (256, 128))                  # fill the MXU M-dim (v6e/v7x: 256)
    tn = _pick_tile(N, (256, 128))
    tk = _pick_tile(H, (512, 256, 128))
    grid = (M // tm, N // tn, H // tk)
    return pl.pallas_call(
        _matmul_bias1_kernel,
        out_shape=jax.ShapeDtypeStruct((M, N), jnp.float32),
        grid_spec=pltpu.PrefetchScalarGridSpec(
            num_scalar_prefetch=0,
            grid=grid,
            in_specs=[
                pl.BlockSpec((tm, tk), lambda m, n, kk: (m, kk)),
                pl.BlockSpec((tk, tn), lambda m, n, kk: (kk, n)),
            ],
            out_specs=pl.BlockSpec((tm, tn), lambda m, n, kk: (m, n)),
        ),
        compiler_params=pltpu.CompilerParams(
            dimension_semantics=("parallel", "parallel", "arbitrary")),
    )(x_flat, w_mix)


# ----------------------------------------------------------------------------
# Glue in plain JAX: gate network, top-k, scatter-to-dense (sub-vreg work).
# ----------------------------------------------------------------------------
def gate_probs(task_full, w_gate, b_gate):
    t = task_full.astype(jnp.float32)
    h = t * jax.nn.sigmoid(t)                       # SiLU
    logits = h @ w_gate.T + b_gate
    return jax.nn.softmax(logits, axis=-1)


def task_moe_forward(params, x, task_full, active_task, k):
    T, _ = task_full.shape
    E = params["b_gate"].shape[0]
    B, L, H = x.shape

    probs = gate_probs(task_full, params["w_gate"], params["b_gate"])       # (T, E)
    top_k_gates, top_k_indices = jax.lax.top_k(probs, k)                    # (T, k)
    rows = jnp.arange(T)[:, None]
    probs_full_quantized = jnp.zeros((T, E), jnp.float32).at[
        rows, top_k_indices].set(1.0)                                       # scatter(1, idx, 1)

    active_gates = top_k_gates[active_task].astype(jnp.float32)             # (k,)
    active_idx = top_k_indices[active_task].astype(jnp.int32)               # (k,)

    # Pre-mix the K selected expert weights once (only K HBM weight reads).
    w_mix = mix_expert_weights(params["w_experts"], active_gates, active_idx,
                               out_dtype=jnp.bfloat16)                      # (H, H)

    # Single dense matmul over all flattened rows, bf16 -> f32 accumulate.
    x_flat = x.reshape(B * L, H).astype(jnp.bfloat16)
    out_flat = dense_matmul_bias1(x_flat, w_mix)                            # (B*L, H) f32
    out = out_flat.reshape(B, L, H).astype(x.dtype)

    return out, probs[active_task], probs_full_quantized


# ----------------------------------------------------------------------------
if __name__ == "__main__":
    B, L, H = 2, 8, 128          # batch, seq length, hidden_size (== emb_size)
    T, E, K = 4, 4, 2            # num tasks, num_experts, top-k
    active_task = 1

    key = jax.random.PRNGKey(0)
    k1, k2, k3, k4, k5 = jax.random.split(key, 5)

    x = jax.random.normal(k1, (B, L, H), dtype=jnp.float32)
    task_full = jax.random.normal(k2, (T, H), dtype=jnp.float32)

    # deterministic parameter init (shapes from __init__)
    w_gate = jax.random.normal(k3, (E, H), dtype=jnp.float32) * 0.05        # nn.Linear(H, E)
    b_gate = jax.random.normal(k4, (E,), dtype=jnp.float32) * 0.05
    w_experts = jax.random.normal(k5, (E, H, H), dtype=jnp.float32) / jnp.sqrt(H)

    params = {"w_gate": w_gate, "b_gate": b_gate, "w_experts": w_experts}

    out, active_probs, probs_q = jax.block_until_ready(
        task_moe_forward(params, x, task_full, active_task, K))

    # ---- pure-JAX reference (bf16-matched, mirrors the kernel arithmetic) ----
    silu = task_full * jax.nn.sigmoid(task_full)
    probs_ref = jax.nn.softmax(silu @ w_gate.T + b_gate, axis=1)
    tkg, tki = jax.lax.top_k(probs_ref, K)
    g_act, i_act = tkg[active_task], tki[active_task]

    w_mix_f32 = jnp.zeros((H, H), jnp.float32)
    for kk in range(K):
        w_mix_f32 = w_mix_f32 + g_act[kk] * w_experts[i_act[kk]]
    w_mix_ref = w_mix_f32.astype(jnp.bfloat16)

    x_bf = x.reshape(B * L, H).astype(jnp.bfloat16)
    out_ref = (1.0 + jnp.dot(x_bf, w_mix_ref,
                             preferred_element_type=jnp.float32)).reshape(B, L, H)
    pq_ref = jnp.zeros((T, E)).at[jnp.arange(T)[:, None], tki].set(1.0)

    assert out.shape == (B, L, H)
    assert active_probs.shape == (E,)
    assert probs_q.shape == (T, E)
    assert jnp.allclose(out, out_ref, rtol=1e-3, atol=1e-3), \
        float(jnp.max(jnp.abs(out - out_ref)))
    assert jnp.allclose(active_probs, probs_ref[active_task], rtol=1e-5, atol=1e-6)
    assert jnp.allclose(probs_q, pq_ref)

    print("KERNEL_OK")
</pallas_src>

<mosaic_0001>
module attributes {stable_mosaic.version = 11 : i64} {
  func.func @_mix_kernel(%arg0: i32, %arg1: i32, %arg2: i32, %arg3: memref<2xi32, #tpu.memory_space<smem>>, %arg4: memref<2xf32, #tpu.memory_space<smem>>, %arg5: memref<1x128x128xf32, #tpu.memory_space<vmem>>, %arg6: memref<128x128xbf16, #tpu.memory_space<vmem>>, %arg7: memref<128x128xf32, #tpu.memory_space<vmem>>) attributes {dimension_semantics = [#tpu.dimension_semantics<parallel>, #tpu.dimension_semantics<parallel>, #tpu.dimension_semantics<arbitrary>], iteration_bounds = array<i64: 1, 1, 2>, scalar_prefetch = 1 : i64, scratch_operands = 1 : i64, tpu.core_type = #tpu.core_type<tc>, window_params = [{transform_indices = @transform_0, window_bounds = array<i64: 2>}, {transform_indices = @transform_1, window_bounds = array<i64: 1, 128, 128>}, {transform_indices = @transform_2, window_bounds = array<i64: 128, 128>}]} {
    %c0_i32 = arith.constant 0 : i32
    %0 = arith.cmpi eq, %arg2, %c0_i32 : i32
    %1 = arith.extui %0 : i1 to i32
    %c0_i32_0 = arith.constant 0 : i32
    %2 = arith.cmpi ne, %1, %c0_i32_0 : i32
    scf.if %2 {
      %cst = arith.constant 0.000000e+00 : f32
      %15 = vector.broadcast %cst : f32 to vector<128x128xf32>
      %c0_8 = arith.constant 0 : index
      %c0_9 = arith.constant 0 : index
      %16 = vector.load %arg7[%c0_8, %c0_9] : memref<128x128xf32, #tpu.memory_space<vmem>>, vector<128x128xf32>
      tpu.vector_store %arg7[%c0_8, %c0_9], %15 {strides = array<i32>} : memref<128x128xf32, #tpu.memory_space<vmem>>, vector<128x128xf32>,
    } else {
    }
    %3 = arith.index_cast %arg2 : i32 to index
    %4 = memref.load %arg4[%3] : memref<2xf32, #tpu.memory_space<smem>>
    %c0 = arith.constant 0 : index
    %c0_1 = arith.constant 0 : index
    %5 = vector.load %arg7[%c0, %c0_1] : memref<128x128xf32, #tpu.memory_space<vmem>>, vector<128x128xf32>
    %c0_2 = arith.constant 0 : index
    %c0_3 = arith.constant 0 : index
    %c0_4 = arith.constant 0 : index
    %6 = vector.load %arg5[%c0_2, %c0_3, %c0_4] : memref<1x128x128xf32, #tpu.memory_space<vmem>>, vector<1x128x128xf32>
    %7 = vector.shape_cast %6 : vector<1x128x128xf32> to vector<128x128xf32>
    %8 = vector.broadcast %4 : f32 to vector<128x128xf32>
    %9 = arith.mulf %8, %7 : vector<128x128xf32>
    %10 = arith.addf %5, %9 : vector<128x128xf32>
    %c0_5 = arith.constant 0 : index
    %c0_6 = arith.constant 0 : index
    %11 = vector.load %arg7[%c0_5, %c0_6] : memref<128x128xf32, #tpu.memory_space<vmem>>, vector<128x128xf32>
    tpu.vector_store %arg7[%c0_5, %c0_6], %10 {strides = array<i32>} : memref<128x128xf32, #tpu.memory_space<vmem>>, vector<128x128xf32>,
    %c1_i32 = arith.constant 1 : i32
    %12 = arith.cmpi eq, %arg2, %c1_i32 : i32
    %13 = arith.extui %12 : i1 to i32
    %c0_i32_7 = arith.constant 0 : i32
    %14 = arith.cmpi ne, %13, %c0_i32_7 : i32
    scf.if %14 {
      %c0_8 = arith.constant 0 : index
      %c0_9 = arith.constant 0 : index
      %15 = vector.load %arg7[%c0_8, %c0_9] : memref<128x128xf32, #tpu.memory_space<vmem>>, vector<128x128xf32>
      %16 = arith.truncf %15 : vector<128x128xf32> to vector<128x128xbf16>
      %c0_10 = arith.constant 0 : index
      %c0_11 = arith.constant 0 : index
      %17 = vector.load %arg6[%c0_10, %c0_11] : memref<128x128xbf16, #tpu.memory_space<vmem>>, vector<128x128xbf16>
      tpu.vector_store %arg6[%c0_10, %c0_11], %16 {strides = array<i32>} : memref<128x128xbf16, #tpu.memory_space<vmem>>, vector<128x128xbf16>,
    } else {
    }
    return
  }
  func.func @transform_0(%arg0: i32, %arg1: i32, %arg2: i32, %arg3: memref<2xi32, #tpu.memory_space<smem>>) -> i32 {
    %c0_i32 = arith.constant 0 : i32
    %c0_i32_0 = arith.constant 0 : i32
    return %c0_i32 : i32
  }
  func.func @transform_1(%arg0: i32, %arg1: i32, %arg2: i32, %arg3: memref<2xi32, #tpu.memory_space<smem>>) -> (i32, i32, i32) {
    %0 = arith.index_cast %arg2 : i32 to index
    %1 = memref.load %arg3[%0] : memref<2xi32, #tpu.memory_space<smem>>
    %c0_i32 = arith.constant 0 : i32
    return %1, %arg0, %arg1 : i32, i32, i32
  }
  func.func @transform_2(%arg0: i32, %arg1: i32, %arg2: i32, %arg3: memref<2xi32, #tpu.memory_space<smem>>) -> (i32, i32) {
    %c0_i32 = arith.constant 0 : i32
    return %arg0, %arg1 : i32, i32
  }
}

</mosaic_0001>

<bundles_post_ra>
// kernel: tpu_custom_call.1
= control target key start
LH: loop header
LB: loop body
LE: loop exit
PB: predicated region body
PF: predicated region fallthrough
CT: control target
= control target key end

     0   :  { %s821_s12 = smov [#allocation4]   ;;  %s1050_s0 = inlined_call_operand.hbm [shape: s32[2], index: 0, kind: input, shape index: {}]   ;;  %s1051_s1 = inlined_call_operand.vmem [shape: f32[2], index: 1, kind: input, shape index: {}]   ;;  %s1052_s2 = inlined_call_operand.hbm [shape: f32[4,128,128], index: 2, kind: input, shape index: {}]   ;;  %s1053_s3 = inlined_call_operand.hbm [shape: bf16[128,128], index: 3, kind: output, shape index: {}]  }
   0x1   :  { %9 = dma.hbm_to_smem %s1050_s0, 16, %s821_s12, [#allocation3] }
   0x2   :  { %783 = dma.done.wait [#allocation3], 16 }
   0x3   :  { %784 = vsyncadd [#allocation3], 4294967280 }
   0x4   :  { %11 = sfence }
   0x5   :  { %12 = vsyncpa [#allocation8], 0 }
   0x6   :  { %13 = vsyncpa [#allocation6], 0 }
   0x7   :  { %15 = vsyncpa [#allocation6 + $0x1], 0 }
   0x8   :  { %16 = vsyncpa [#allocation7], 0  ;;  %s853_s15 = smov 0   ;;  %s855_s16 = smov 0  }
   0x9   :  { %s857_s17 = smov 0   ;;  %s859_s18 = smov 0  }
   0xa   :  { %s861_s19 = smov 0   ;;  %s863_s20 = smov 0  }
   0xb LB: > { %s505_s0 = sadd.s32 4294967295, %s819_s20   ;;  %p82_p0 = scmp.ne.s32.totalorder %s807_s17, %s803_s16  ;;  %s819_s20 = sphi %s863_s20, %s22_s20   ;;  %s815_s19 = sphi %s861_s19, %s1073_s19   ;;  %s811_s18 = sphi %s859_s18, %s1072_s18   ;;  %s807_s17 = sphi %s857_s17, %s1071_s17   ;;  %s803_s16 = sphi %s855_s16, %s1070_s16   ;;  %s799_s15 = sphi %s853_s15, %s1069_s15  }
   0xc   : > { %p83_p1 = scmp.eq.s32.totalorder %s819_s20, 0  ;;  %p88_p2 = scmp.ne.s32.totalorder %s803_s16, %s799_s15 }
   0xd   : > { %p888_p3 = scmp.eq.s32.totalorder %s505_s0, 0  ;;  %p506_p4 = scmp.ge.s32.totalorder %s819_s20, 1 }
   0xe   : > { %p127_p6 = scmp.lt.s32.totalorder %s819_s20, 3  ;;  %s140_s25 = sshll.u32 %s1051_s1, 4  ;;  %s141_s25 = int_to_ptr.vmem [resolvable:$true] %s140_s25 }
   0xf   : > { %s1058_s21 = scalar_select %p888_p3, 1, 0 }
  0x10   : > { %p895_p5 = por %p888_p3, %p88_p2  ;;  %p903_p7 = por %p83_p1, %p82_p0 }
  0x11   : > { %p907_p8 = pnand %p506_p4, %p127_p6  ;;  %s34_s29 = sadd.s32 1, %s815_s19 }
  0x12   : > { %s1059_s22 = scalar_select %p895_p5, 1, 0 }
  0x13   : > { %s1061_s27 = scalar_select %p907_p8, 1, 0 }
  0x14   : > { %p613_p9 = pneg %p907_p8  ;;  %p920_p11 = scmp.ge.s32.totalorder %s34_s29, 2 }
  0x15   : > { %s66_s4 = sld [smem:[#allocation4 + %s815_s19]]  ;;  %s151_s5 = sand.u32 1, %s807_s17  }
  0x16   : > { %p915_p10 = pnand %p613_p9, %p888_p3  ;;  %s692_s6 = scalar_lea.vmem %s141_s25, 16 }
  0x17   : > { %p693_p12 = scmp.ne.s32.totalorder %s141_s25, %s692_s6  ;;  %p700_p2 = scmp.lt.s32.totalorder %s141_s25, %s141_s25 }
  0x18   : > { %p694_p13 = pneg %p915_p10  ;;  %p701_p4 = scmp.lt.s32.totalorder %s692_s6, %s692_s6 }
  0x1a   : > { %p695_p0 = pnand %p694_p13, %p693_p12  ;;  %p702_p6 = por %p701_p4, %p700_p2 }
  0x1c   : > { %p696_p1 = pneg %p695_p0 }
  0x1e   : > { %p703_p9 = pnand %p702_p6, %p696_p1 }
  0x20   : > { %706 = shalt.err (!%p703_p9)
}
  0x21   : > { %s822_s7 = smov [#allocation5]   ;;  %s1075_s29 = smov (%p920_p11, %s34_s29), 0 }
  0x22   : > { %616 = dma.vmem_to_smem (!%p915_p10), %s141_s25, 16, %s822_s7, [#allocation8]  }
  0x23   : > { %p624_p12 = scmp.lt.s32.totalorder %s819_s20, 2  ;;  %s509_s8 = sshll.u32 %s151_s5, 7 }
  0x24   : > { %s67_s9 = sld [smem:[#allocation4 + %s1075_s29]]  ;;  %s75_s12 = sadd.s32 1, %s807_s17 }
  0x25   : > { %s603_s10 = scalar_select %p903_p7, [#allocation4], [#allocation11] }
  0x26   : > { %s604_s11 = scalar_select %p903_p7, %s815_s19, 0 }
  0x27   : > { %s1077_s10 = smov (!%p624_p12, %s603_s10), [#allocation12]  ;;  %p946_p13 = pnand %p624_p12, %p903_p7 }
  0x28   : > { %s1079_s11 = smov (!%p624_p12, %s604_s11), 0  ;;  %s155_s23 = scalar_lea.vmem [#allocation9], %s509_s8 }
  0x29   : > { %s156_s15 = sld [smem:[%s1077_s10 + %s1079_s11]]  ;;  %s166_s24 = sshll.u32 %s155_s23, 4  ;;  %s953_s24 = int_to_ptr.vmem [resolvable:$true] %s166_s24 }
  0x2a   : > { %s68_s14 = ssub.s32 %s66_s4, %s67_s9  ;;  %s962_s26 = scalar_lea.sflag [#allocation6], %s151_s5 }
  0x2b   : > { %p73_p10 = scmp.eq.s32.totalorder %s68_s14, 0  ;;  %p709_p11 = pneg %p946_p13 }
  0x2c   : > { %s712_s10 = scalar_lea.hbm %s1052_s2, 8192 }
  0x2d   : > { %s951_s25 = scalar_select %p73_p10, %s807_s17, %s75_s12  }
  0x2f   : > { %s537_s28 = sshll.u32 %s156_s15, 11 }
  0x30   : > { %s958_s7 = scalar_lea.hbm %s1052_s2, %s537_s28 }
  0x31   : > { %s707_s4 = scalar_lea.hbm %s958_s7, 2048  ;;  %p713_p2 = scmp.lt.s32.totalorder %s958_s7, %s1052_s2 }
  0x32   : > { %p708_p7 = scmp.ne.s32.totalorder %s958_s7, %s707_s4  ;;  %p714_p4 = scmp.lt.s32.totalorder %s712_s10, %s707_s4 }
  0x34   : > { %p710_p0 = pnand %p709_p11, %p708_p7  ;;  %p715_p6 = por %p714_p4, %p713_p2 }
  0x36   : > { %p711_p1 = pneg %p710_p0 }
  0x38   : > { %p716_p9 = pnand %p715_p6, %p711_p1 }
  0x3a   : > { %719 = shalt.err (!%p716_p9)
}
  0x3b   : > { %s720_s5 = scalar_lea.vmem %s953_s24, 2048  ;;  %s823_s14 = smov [#allocation9]  }
  0x3c   : > { %p721_p12 = scmp.ne.s32.totalorder %s953_s24, %s720_s5  ;;  %s725_s15 = sshll.u32 %s823_s14, 4  ;;  %s726_s15 = int_to_ptr.vmem [resolvable:$false] %s725_s15 }
  0x3d   : > { %s727_s23 = scalar_lea.vmem %s726_s15, 4096  ;;  %p728_p0 = scmp.lt.s32.totalorder %s953_s24, %s726_s15 }
  0x3e   : > { %p723_p10 = pnand %p721_p12, %p709_p11  ;;  %p729_p5 = scmp.lt.s32.totalorder %s727_s23, %s720_s5 }
  0x40   : > { %p724_p7 = pneg %p723_p10  ;;  %p730_p3 = por %p729_p5, %p728_p0 }
  0x42   : > { %p731_p8 = pnand %p730_p3, %p724_p7 }
  0x44   : > { %734 = shalt.err (!%p731_p8)
}
  0x45   : > { %s824_s28 = smov 128   ;;  %s825_s30 = smov 8  }
  0x46   : > { %622 = dma.hbm_to_vmem [thread:$0]  (!%p946_p13), %s958_s7, 2048, %s953_s24, %s962_s26, %s824_s28, %s824_s28, %s825_s30  }
  0x47   : > { %p1065_p11 = scmp.ne.s32.totalorder %s1061_s27, 0 }
  0x48   : > { %p1066_p1 = scmp.ne.s32.totalorder (!%p1065_p11), %s1058_s21, 0 }
  0x49   : > { %178 = sbr.rel (%p1065_p11) target bundleno = 147 (0x93), region = 28 }
  0x4e   : > { %786 = dma.done.wait (%p1066_p1), [#allocation8], 16  }
  0x4f   : > { %788 = vsyncadd (%p1066_p1), [#allocation8], 4294967280  ;;  %s184_s6 = sand.u32 1, %s803_s16   ;;  %p1067_p3 = scmp.ne.s32.totalorder %s1059_s22, 0 }
  0x50   : > { %s514_s4 = sshll.u32 %s184_s6, 7  ;;  %s185_s8 = scalar_lea.sflag [#allocation6], %s184_s6 }
  0x51   : > { %s990_s9 = scalar_lea.vmem [#allocation9], %s514_s4 }
  0x52   : > { %790 = dma.done.wait (%p1067_p3), %s185_s8, 2048  }
  0x53   : > { %792 = vsyncadd (%p1067_p3), %s185_s8, 4294965248 }
  0x54   : > { %193 = sfence }
  0x55   : > { %p515_p5 = scmp.ne.s32.totalorder %s811_s18, 0 }
  0x57   : > { %211 = sbr.rel (%p515_p5) target bundleno = 101 (0x65), region = 40 }
  0x5c   : > { %v826_v0 = vmov 0.0  }
  0x5d   : > { %212 = vst [vmem:[#allocation2 + $0x30] sm:$0xff] %v826_v0  ;;  %213 = vst [vmem:[#allocation2] sm:$0xff] %v826_v0 }
  0x5e   : > { %214 = vst [vmem:[#allocation2 + $0x58] sm:$0xff] %v826_v0  ;;  %215 = vst [vmem:[#allocation2 + $0x18] sm:$0xff] %v826_v0 }
  0x5f   : > { %216 = vst [vmem:[#allocation2 + $0x50] sm:$0xff] %v826_v0  ;;  %217 = vst [vmem:[#allocation2 + $0x68] sm:$0xff] %v826_v0 }
  0x60   : > { %218 = vst [vmem:[#allocation2 + $0x8] sm:$0xff] %v826_v0  ;;  %219 = vst [vmem:[#allocation2 + $0x48] sm:$0xff] %v826_v0 }
  0x61   : > { %220 = vst [vmem:[#allocation2 + $0x40] sm:$0xff] %v826_v0  ;;  %221 = vst [vmem:[#allocation2 + $0x20] sm:$0xff] %v826_v0 }
  0x62   : > { %222 = vst [vmem:[#allocation2 + $0x10] sm:$0xff] %v826_v0  ;;  %223 = vst [vmem:[#allocation2 + $0x38] sm:$0xff] %v826_v0 }
  0x63   : > { %224 = vst [vmem:[#allocation2 + $0x60] sm:$0xff] %v826_v0  ;;  %225 = vst [vmem:[#allocation2 + $0x70] sm:$0xff] %v826_v0 }
  0x64   : > { %226 = vst [vmem:[#allocation2 + $0x78] sm:$0xff] %v826_v0  ;;  %227 = vst [vmem:[#allocation2 + $0x28] sm:$0xff] %v826_v0 }
  0x65 PF: > { %s228_s21 = sld [smem:[#allocation5 + %s811_s18]]  ;;  %v245_v1 = vld [vmem:[%s990_s9] sm:$0xff]  ;;  %v246_v2 = vld [vmem:[%s990_s9 + $0x8] sm:$0xff]  ;;  %v247_v3 = vld [vmem:[%s990_s9 + $0x10] sm:$0xff]  ;;  %p516_p8 = scmp.ne.s32.totalorder %s811_s18, 1 }
  0x66   : > { %v229_v4 = vld [vmem:[#allocation2 + $0x30] sm:$0xff]  ;;  %v230_v5 = vld [vmem:[#allocation2] sm:$0xff]  ;;  %v231_v6 = vld [vmem:[#allocation2 + $0x58] sm:$0xff] }
  0x67   : > { %v232_v7 = vld [vmem:[#allocation2 + $0x18] sm:$0xff]  ;;  %v249_v9 = vld [vmem:[%s990_s9 + $0x20] sm:$0xff]  ;;  %v250_v10 = vld [vmem:[%s990_s9 + $0x28] sm:$0xff] }
  0x68   : > { %v248_v8 = vld [vmem:[%s990_s9 + $0x18] sm:$0xff]  ;;  %v251_v11 = vld [vmem:[%s990_s9 + $0x30] sm:$0xff]  ;;  %v234_v15 = vld [vmem:[#allocation2 + $0x68] sm:$0xff] }
  0x69   : > { %v252_v12 = vld [vmem:[%s990_s9 + $0x38] sm:$0xff]  ;;  %v233_v14 = vld [vmem:[#allocation2 + $0x50] sm:$0xff]  ;;  %v235_v16 = vld [vmem:[#allocation2 + $0x8] sm:$0xff] }
  0x6a   : > { %v236_v21 = vld [vmem:[#allocation2 + $0x48] sm:$0xff]  ;;  %v253_v22 = vld [vmem:[%s990_s9 + $0x40] sm:$0xff]  ;;  %v239_v30 = vld [vmem:[#allocation2 + $0x10] sm:$0xff] }
  0x6b   : > { %v261_v13 = vstv %s228_s21  ;;  %v254_v23 = vld [vmem:[%s990_s9 + $0x48] sm:$0xff]  ;;  %v237_v28 = vld [vmem:[#allocation2 + $0x40] sm:$0xff]  ;;  %v255_v31 = vld [vmem:[%s990_s9 + $0x50] sm:$0xff] }
  0x6c   : > { %v262_v17 = vmul.f32 %v261_v13, %v245_v1  ;;  %v263_v18 = vmul.f32 %v261_v13, %v246_v2  ;;  %v264_v19 = vmul.f32 %v261_v13, %v247_v3  ;;  %v265_v20 = vmul.f32 %v261_v13, %v248_v8  ;;  %v238_v29 = vld [vmem:[#allocation2 + $0x20] sm:$0xff]  ;;  %v256_v32 = vld [vmem:[%s990_s9 + $0x58] sm:$0xff]  ;;  %v258_v38 = vld [vmem:[%s990_s9 + $0x68] sm:$0xff] }
  0x6d   : > { %v266_v24 = vmul.f32 %v261_v13, %v249_v9  ;;  %v267_v25 = vmul.f32 %v261_v13, %v250_v10  ;;  %v268_v26 = vmul.f32 %v261_v13, %v251_v11  ;;  %v269_v27 = vmul.f32 %v261_v13, %v252_v12  ;;  %v257_v37 = vld [vmem:[%s990_s9 + $0x60] sm:$0xff]  ;;  %v259_v39 = vld [vmem:[%s990_s9 + $0x70] sm:$0xff]  ;;  %v240_v44 = vld [vmem:[#allocation2 + $0x38] sm:$0xff] }
  0x6e   : > { %v278_v33 = vadd.f32 %v262_v17, %v229_v4  ;;  %v279_v34 = vadd.f32 %v263_v18, %v230_v5  ;;  %v280_v35 = vadd.f32 %v264_v19, %v231_v6  ;;  %v281_v36 = vadd.f32 %v265_v20, %v232_v7  ;;  %v241_v45 = vld [vmem:[#allocation2 + $0x60] sm:$0xff]  ;;  %v260_v46 = vld [vmem:[%s990_s9 + $0x78] sm:$0xff]  ;;  %v242_v51 = vld [vmem:[#allocation2 + $0x70] sm:$0xff] }
  0x6f   : > { %v282_v40 = vadd.f32 %v266_v24, %v233_v14  ;;  %v283_v41 = vadd.f32 %v267_v25, %v234_v15  ;;  %v284_v42 = vadd.f32 %v268_v26, %v235_v16  ;;  %v285_v43 = vadd.f32 %v269_v27, %v236_v21  ;;  %v243_v52 = vld [vmem:[#allocation2 + $0x78] sm:$0xff]  ;;  %v244_v53 = vld [vmem:[#allocation2 + $0x28] sm:$0xff] }
  0x70   : > { %294 = vst [vmem:[#allocation2 + $0x30] sm:$0xff] %v278_v33  ;;  %295 = vst [vmem:[#allocation2] sm:$0xff] %v279_v34  ;;  %v270_v47 = vmul.f32 %v261_v13, %v253_v22  ;;  %v271_v48 = vmul.f32 %v261_v13, %v254_v23  ;;  %v272_v49 = vmul.f32 %v261_v13, %v255_v31 }
  0x71   : > { %296 = vst [vmem:[#allocation2 + $0x58] sm:$0xff] %v280_v35  ;;  %297 = vst [vmem:[#allocation2 + $0x18] sm:$0xff] %v281_v36  ;;  %v273_v50 = vmul.f32 %v261_v13, %v256_v32  ;;  %v274_v54 = vmul.f32 %v261_v13, %v257_v37  ;;  %v275_v55 = vmul.f32 %v261_v13, %v258_v38 }
  0x72   : > { %298 = vst [vmem:[#allocation2 + $0x50] sm:$0xff] %v282_v40  ;;  %299 = vst [vmem:[#allocation2 + $0x68] sm:$0xff] %v283_v41  ;;  %v276_v56 = vmul.f32 %v261_v13, %v259_v39  ;;  %v277_v57 = vmul.f32 %v261_v13, %v260_v46  ;;  %v286_v58 = vadd.f32 %v270_v47, %v237_v28 }
  0x73   : > { %300 = vst [vmem:[#allocation2 + $0x8] sm:$0xff] %v284_v42  ;;  %301 = vst [vmem:[#allocation2 + $0x48] sm:$0xff] %v285_v43  ;;  %v287_v59 = vadd.f32 %v271_v48, %v238_v29  ;;  %v288_v60 = vadd.f32 %v272_v49, %v239_v30  ;;  %v289_v61 = vadd.f32 %v273_v50, %v240_v44 }
  0x74   : > { %v290_v62 = vadd.f32 %v274_v54, %v241_v45  ;;  %v291_v63 = vadd.f32 %v275_v55, %v242_v51  ;;  %v292_v0 = vadd.f32 %v276_v56, %v243_v52  ;;  %v293_v1 = vadd.f32 %v277_v57, %v244_v53  ;;  %302 = vst [vmem:[#allocation2 + $0x40] sm:$0xff] %v286_v58  ;;  %313 = sbr.rel (%p516_p8) target bundleno = 131 (0x83), region = 44 }
  0x75   : > { %303 = vst [vmem:[#allocation2 + $0x20] sm:$0xff] %v287_v59  ;;  %304 = vst [vmem:[#allocation2 + $0x10] sm:$0xff] %v288_v60 }
  0x76   : > { %305 = vst [vmem:[#allocation2 + $0x38] sm:$0xff] %v289_v61  ;;  %306 = vst [vmem:[#allocation2 + $0x60] sm:$0xff] %v290_v62 }
  0x77   : > { %307 = vst [vmem:[#allocation2 + $0x70] sm:$0xff] %v291_v63  ;;  %308 = vst [vmem:[#allocation2 + $0x78] sm:$0xff] %v292_v0 }
  0x78   : > { %309 = vst [vmem:[#allocation2 + $0x28] sm:$0xff] %v293_v1 }
  0x79   : > { %v314_v2 = vld [vmem:[#allocation2 + $0x30] sm:$0xff]  ;;  %v315_v3 = vld [vmem:[#allocation2] sm:$0xff]  ;;  %v316_v4 = vld [vmem:[#allocation2 + $0x58] sm:$0xff] }
  0x7a   : > { %v557_v5 = vpack.c.bf16 %v315_v3, %v314_v2  ;;  %v317_v6 = vld [vmem:[#allocation2 + $0x18] sm:$0xff]  ;;  %v318_v7 = vld [vmem:[#allocation2 + $0x50] sm:$0xff]  ;;  %v319_v8 = vld [vmem:[#allocation2 + $0x68] sm:$0xff] }
  0x7b   : > { %v562_v9 = vpack.c.bf16 %v317_v6, %v316_v4  ;;  %v567_v10 = vpack.c.bf16 %v319_v8, %v318_v7  ;;  %v320_v11 = vld [vmem:[#allocation2 + $0x8] sm:$0xff]  ;;  %v322_v13 = vld [vmem:[#allocation2 + $0x40] sm:$0xff] }
  0x7c   : > { %v321_v12 = vld [vmem:[#allocation2 + $0x48] sm:$0xff]  ;;  %558 = vst [vmem:[#allocation10] sm:$0xff] %v557_v5   ;;  %v323_v15 = vld [vmem:[#allocation2 + $0x20] sm:$0xff]  ;;  %v324_v16 = vld [vmem:[#allocation2 + $0x10] sm:$0xff] }
  0x7d   : > { %v572_v14 = vpack.c.bf16 %v321_v12, %v320_v11  ;;  %v325_v17 = vld [vmem:[#allocation2 + $0x38] sm:$0xff]  ;;  %594 = vst [vmem:[#allocation10 + $0x8] sm:$0xff] %v562_v9   ;;  %595 = vst [vmem:[#allocation10 + $0x10] sm:$0xff] %v567_v10   ;;  %v577_v18 = vpack.c.bf16 %v323_v15, %v322_v13  ;;  %v326_v20 = vld [vmem:[#allocation2 + $0x60] sm:$0xff] }
  0x7e   : > { %v582_v19 = vpack.c.bf16 %v325_v17, %v324_v16  ;;  %v327_v21 = vld [vmem:[#allocation2 + $0x70] sm:$0xff]  ;;  %v328_v22 = vld [vmem:[#allocation2 + $0x78] sm:$0xff] }
  0x7f   : > { %596 = vst [vmem:[#allocation10 + $0x18] sm:$0xff] %v572_v14   ;;  %v587_v23 = vpack.c.bf16 %v327_v21, %v326_v20  ;;  %v329_v24 = vld [vmem:[#allocation2 + $0x28] sm:$0xff]  ;;  %597 = vst [vmem:[#allocation10 + $0x20] sm:$0xff] %v577_v18  }
  0x80   : > { %598 = vst [vmem:[#allocation10 + $0x28] sm:$0xff] %v582_v19   ;;  %v592_v25 = vpack.c.bf16 %v329_v24, %v328_v22 }
  0x81   : > { %599 = vst [vmem:[#allocation10 + $0x30] sm:$0xff] %v587_v23  }
  0x82   : > { %600 = vst [vmem:[#allocation10 + $0x38] sm:$0xff] %v592_v25  }
  0x83 PF: > { %p1017_p13 = scmp.eq.s32.totalorder %s505_s0, 1  ;;  %s827_s22 = smov [#allocation10]  }
  0x84   : > { %s420_s27 = sshll.u32 %s827_s22, 4  ;;  %s421_s27 = int_to_ptr.vmem [resolvable:$true] %s420_s27 }
  0x85   : > { %s735_s13 = scalar_lea.vmem %s421_s27, 1024  ;;  %p742_p9 = scmp.lt.s32.totalorder %s421_s27, %s421_s27 }
  0x86   : > { %p736_p2 = scmp.ne.s32.totalorder %s421_s27, %s735_s13  ;;  %p743_p12 = scmp.lt.s32.totalorder %s735_s13, %s735_s13 }
  0x88   : > { %p737_p4 = pnand %p736_p2, %p1017_p13  ;;  %p744_p10 = por %p743_p12, %p742_p9 }
  0x8a   : > { %p738_p6 = pneg %p737_p4 }
  0x8c   : > { %p745_p7 = pnand %p744_p10, %p738_p6 }
  0x8e   : > { %748 = shalt.err (!%p745_p7)
}
  0x8f   : > { %s828_s24 = smov 64   ;;  %s829_s0 = smov 4  }
  0x90   : > { %610 = dma.vmem_to_hbm [thread:$0]  (%p1017_p13), %s421_s27, 1024, %s1053_s3, [#allocation7], %s828_s24, %s828_s24, %s829_s0  }
  0x91   : > { %794 = dma.done.wait (%p1017_p13), [#allocation7], 1024  }
  0x92   : > { %796 = vsyncadd (%p1017_p13), [#allocation7], 4294966272 }
  0x93 PF: > { %s22_s20 = sadd.s32 1, %s819_s20   ;;  %s1069_s15 = smov %s803_s16 }
  0x94   : > { %p19_p0 = scmp.ge.s32.totalorder %s22_s20, 4   ;;  %s1070_s16 = smov %s807_s17 }
  0x95   : > { %s1071_s17 = smov %s951_s25  ;;  %s1072_s18 = smov %s815_s19 }
  0x96   : > { %s1073_s19 = smov %s1075_s29  ;;  %21 = sbr.rel (!%p19_p0) target bundleno = 11 (0xb), region = 79 }
  0x9b   :  { %436 = vsyncpa [#allocation6], 1 }
  0x9c   :  { %438 = vsyncpa [#allocation6 + $0x1], 1 }
  0x9d   :  { %439 = vsyncpa [#allocation7], 1 }
  0x9e   :  { %441 = vsyncpa [#allocation7 + $0x1], 1 }
  0x9f   :  { %442 = vsyncpa [#allocation8], 1 }
  0xa0   :  { %444 = vsyncpa [#allocation8 + $0x1], 1 }

</bundles_post_ra>
